<compile_context>
chip_gen: v5e
topology: v5e:2x2
jax: 0.10.0
libtpu: 0.0.40
codegen_flags: <defaults>
</compile_context>

<pallas_src>
import functools
import math

import jax
import jax.numpy as jnp
from jax.experimental import pallas as pl
from jax.experimental.pallas import tpu as pltpu


def _modulated_conv2d_kernel(x_ref, w_ref, s_ref, d_ref, o_ref, *,
                             K, Wp, Cout, L_out, matmul_dtype):
    # x_ref : (1, Cin, Lflat)    padded input, spatial flattened (Hp*Wp + K-1 tail zeros)
    # w_ref : (K*K, Cout, Cin)   base weight taps, equalized-lr scale folded, matmul_dtype
    # s_ref : (1, Cin, 1)        per-sample style modulation (EqualLinear output), f32
    # d_ref : (1, Cout, 1)       per-sample demodulation factors, f32
    # o_ref : (1, Cout, L_out)   output block, L_out = Hout*Wp (pad cols dropped in wrapper)

    # --- modulate the input per-Cin (fused=False formulation), cast once for the MXU ---
    xs = (x_ref[0].astype(jnp.float32) * s_ref[0]).astype(matmul_dtype)     # (Cin, Lflat)

    # --- per-tap MXU accumulation: each tap is a pure lane-offset slice ---
    acc = jnp.zeros((Cout, L_out), jnp.float32)
    for kh in range(K):
        for kw in range(K):
            t = kh * K + kw
            off = kh * Wp + kw
            tap = xs[:, off:off + L_out]                                    # (Cin, L_out)
            acc = acc + jnp.dot(w_ref[t], tap,
                                preferred_element_type=jnp.float32)

    # --- demodulate: per-Cout row scale, then lane-dense store ---
    o_ref[0] = (acc * d_ref[0]).astype(o_ref.dtype)


def modulated_conv2d(x, weight, mod_weight, mod_bias, style, *,
                     demodulate=True, eps=1e-8, matmul_dtype=jnp.bfloat16):
    """StyleGAN2 ModulatedConv2d forward (standard path: stride 1, 'same' padding).

    x          : (N, Cin, H, W)
    weight     : (1, Cout, Cin, K, K)   (the nn.Parameter)
    mod_weight : (Cin, style_dim)       EqualLinear weight
    mod_bias   : (Cin,)                 EqualLinear bias
    style      : (N, style_dim)
    Returns (N, Cout, H, W), matching the PyTorch module's standard branch.
    """
    N, Cin, H, W = x.shape
    _, Cout, _, K, _ = weight.shape
    style_dim = style.shape[1]
    pad = K // 2
    Hout, Wout = H, W
    Hp, Wp = H + 2 * pad, W + 2 * pad
    L_out = Hout * Wp                     # lane-dense output row length (pad cols kept)
    Lflat = Hp * Wp + (K - 1)             # K-1 tail zeros so the last tap slice is in-bounds

    scale = 1.0 / math.sqrt(Cin * K * K)          # equalized-lr conv scale
    mod_scale = 1.0 / math.sqrt(style_dim)        # EqualLinear scale (lr_mul=1)

    # --- wrapper-side XLA glue (amortized over the batch grid) -----------------
    # EqualLinear modulation as one batched GEMM (no degenerate M=1 matvec in-kernel).
    style_mod = (style.astype(jnp.float32)
                 @ (mod_weight.astype(jnp.float32) * mod_scale).T
                 + mod_bias.astype(jnp.float32))                      # (N, Cin)

    # Demodulation factors: rsqrt(sum (scale*W*s)^2 + eps) = rsqrt(s^2 @ Wsq^T + eps).
    if demodulate:
        w_sq = (scale * scale) * jnp.sum(weight[0].astype(jnp.float32) ** 2,
                                         axis=(2, 3))                 # (Cout, Cin)
        demod = jax.lax.rsqrt(style_mod ** 2 @ w_sq.T + eps)          # (N, Cout)
    else:
        demod = jnp.ones((N, Cout), jnp.float32)

    # Spatial pad + flatten so each (kh, kw) tap is a pure lane-offset slice in-kernel.
    x_pad = jnp.pad(x, ((0, 0), (0, 0), (pad, pad), (pad, pad)))
    x_flat = jnp.pad(x_pad.reshape(N, Cin, Hp * Wp),
                     ((0, 0), (0, 0), (0, K - 1)))                    # (N, Cin, Lflat)

    # Base weight: constant across the grid, scale folded, cast to the MXU dtype once.
    w_taps = (jnp.transpose(weight[0], (2, 3, 0, 1))                  # (K, K, Cout, Cin)
              .reshape(K * K, Cout, Cin) * scale).astype(matmul_dtype)

    s3 = style_mod.reshape(N, Cin, 1)
    d3 = demod.reshape(N, Cout, 1)

    kernel = functools.partial(
        _modulated_conv2d_kernel,
        K=K, Wp=Wp, Cout=Cout, L_out=L_out, matmul_dtype=matmul_dtype)

    out = pl.pallas_call(
        kernel,
        out_shape=jax.ShapeDtypeStruct((N, Cout, L_out), x.dtype),
        grid_spec=pltpu.PrefetchScalarGridSpec(
            num_scalar_prefetch=0,
            grid=(N,),
            in_specs=[
                pl.BlockSpec((1, Cin, Lflat), lambda n: (n, 0, 0)),
                pl.BlockSpec((K * K, Cout, Cin), lambda n: (0, 0, 0)),
                pl.BlockSpec((1, Cin, 1), lambda n: (n, 0, 0)),
                pl.BlockSpec((1, Cout, 1), lambda n: (n, 0, 0)),
            ],
            out_specs=pl.BlockSpec((1, Cout, L_out), lambda n: (n, 0, 0)),
        ),
        compiler_params=pltpu.CompilerParams(
            dimension_semantics=("parallel",),
            vmem_limit_bytes=32 * 1024 * 1024),
    )(x_flat, w_taps, s3, d3)

    # Cheap wrapper reshape + drop the pad columns (no in-kernel relayout).
    return out.reshape(N, Cout, Hout, Wp)[..., :Wout]


if __name__ == "__main__":
    key = jax.random.PRNGKey(0)
    k_x, k_w, k_mw, k_mb, k_s = jax.random.split(key, 5)

    # Module config: ModulatedConv2d(in_channel=4, out_channel=8, kernel_size=3,
    #                                style_dim=16, demodulate=True)
    N, Cin, H, W = 2, 4, 16, 16
    Cout, K, style_dim = 8, 3, 16

    x = jax.random.normal(k_x, (N, Cin, H, W), jnp.float32)
    weight = jax.random.normal(k_w, (1, Cout, Cin, K, K), jnp.float32)     # ~ torch.randn
    mod_weight = jax.random.normal(k_mw, (Cin, style_dim), jnp.float32)    # EqualLinear weight
    # torch init: bias filled with bias_init=1; add small noise to exercise the path.
    mod_bias = jnp.ones((Cin,), jnp.float32) + 0.05 * jax.random.normal(k_mb, (Cin,), jnp.float32)
    style = jax.random.normal(k_s, (N, style_dim), jnp.float32)

    # Pure-JAX reference mirroring the PyTorch forward (standard branch).
    scale = 1.0 / math.sqrt(Cin * K * K)
    mod_scale = 1.0 / math.sqrt(style_dim)
    s = style @ (mod_weight * mod_scale).T + mod_bias                      # (N, Cin)
    w = scale * weight * s[:, None, :, None, None]                         # (N, Cout, Cin, K, K)
    demod_ref = jax.lax.rsqrt(jnp.sum(w * w, axis=(2, 3, 4)) + 1e-8)
    w = w * demod_ref[:, :, None, None, None]
    pad = K // 2
    ref = jnp.concatenate([
        jax.lax.conv_general_dilated(
            x[n:n + 1], w[n], window_strides=(1, 1),
            padding=((pad, pad), (pad, pad)),
            dimension_numbers=("NCHW", "OIHW", "NCHW"))
        for n in range(N)], axis=0)

    # f32 MXU path: tight check.
    out_f32 = jax.block_until_ready(
        modulated_conv2d(x, weight, mod_weight, mod_bias, style,
                         demodulate=True, matmul_dtype=jnp.float32))
    assert out_f32.shape == (N, Cout, H, W)
    err_f32 = float(jnp.max(jnp.abs(out_f32 - ref)))
    assert err_f32 < 1e-4, f"f32 path max abs error {err_f32}"

    # Default bf16 MXU path (fast path on v5e/v6e/v7x): relative check.
    out_bf16 = jax.block_until_ready(
        modulated_conv2d(x, weight, mod_weight, mod_bias, style, demodulate=True))
    rel_bf16 = float(jnp.max(jnp.abs(out_bf16 - ref)) /
                     (jnp.max(jnp.abs(ref)) + 1e-6))
    assert rel_bf16 < 3e-2, f"bf16 path max relative error {rel_bf16}"

    print("KERNEL_OK")
</pallas_src>

<mosaic_0001>
module attributes {stable_mosaic.version = 11 : i64} {
  func.func @_modulated_conv2d_kernel(%arg0: i32, %arg1: memref<1x4x326xf32, #tpu.memory_space<vmem>>, %arg2: memref<9x8x4xf32, #tpu.memory_space<vmem>>, %arg3: memref<1x4x1xf32, #tpu.memory_space<vmem>>, %arg4: memref<1x8x1xf32, #tpu.memory_space<vmem>>, %arg5: memref<1x8x288xf32, #tpu.memory_space<vmem>>) attributes {dimension_semantics = [#tpu.dimension_semantics<parallel>], iteration_bounds = array<i64: 2>, scalar_prefetch = 0 : i64, scratch_operands = 0 : i64, tpu.core_type = #tpu.core_type<tc>, window_params = [{transform_indices = @transform_0, window_bounds = array<i64: 1, 4, 326>}, {pipeline_mode = #tpu.pipeline_mode<synchronous>, transform_indices = @transform_1, window_bounds = array<i64: 9, 8, 4>}, {transform_indices = @transform_2, window_bounds = array<i64: 1, 4, 1>}, {transform_indices = @transform_3, window_bounds = array<i64: 1, 8, 1>}, {transform_indices = @transform_4, window_bounds = array<i64: 1, 8, 288>}]} {
    %c0 = arith.constant 0 : index
    %c0_0 = arith.constant 0 : index
    %c0_1 = arith.constant 0 : index
    %0 = vector.load %arg1[%c0, %c0_0, %c0_1] : memref<1x4x326xf32, #tpu.memory_space<vmem>>, vector<1x4x326xf32>
    %1 = vector.shape_cast %0 : vector<1x4x326xf32> to vector<4x326xf32>
    %c0_2 = arith.constant 0 : index
    %c0_3 = arith.constant 0 : index
    %c0_4 = arith.constant 0 : index
    %2 = vector.load %arg3[%c0_2, %c0_3, %c0_4] : memref<1x4x1xf32, #tpu.memory_space<vmem>>, vector<1x4x1xf32>
    %3 = vector.shape_cast %2 : vector<1x4x1xf32> to vector<4x1xf32>
    %4 = vector.broadcast %3 : vector<4x1xf32> to vector<4x326xf32>
    %5 = arith.mulf %1, %4 : vector<4x326xf32>
    %cst = arith.constant 0.000000e+00 : f32
    %6 = vector.broadcast %cst : f32 to vector<8x288xf32>
    %7 = vector.extract_strided_slice %5 {offsets = [0, 0], sizes = [4, 288], strides = [1, 1]} : vector<4x326xf32> to vector<4x288xf32>
    %c0_5 = arith.constant 0 : index
    %c0_6 = arith.constant 0 : index
    %c0_7 = arith.constant 0 : index
    %8 = vector.load %arg2[%c0_5, %c0_6, %c0_7] : memref<9x8x4xf32, #tpu.memory_space<vmem>>, vector<1x8x4xf32>
    %9 = vector.shape_cast %8 : vector<1x8x4xf32> to vector<8x4xf32>
    %cst_8 = arith.constant dense<0.000000e+00> : vector<8x288xf32>
    %10 = tpu.matmul %9, %7, %cst_8 {dimension_numbers = #tpu.dot_dimension_numbers<[1], [0], [0], [1], [0, 0, 1, 1], [], []>} : vector<8x4xf32>, vector<4x288xf32>, vector<8x288xf32> -> vector<8x288xf32>
    %11 = arith.addf %6, %10 : vector<8x288xf32>
    %12 = vector.extract_strided_slice %5 {offsets = [0, 1], sizes = [4, 288], strides = [1, 1]} : vector<4x326xf32> to vector<4x288xf32>
    %c1 = arith.constant 1 : index
    %c0_9 = arith.constant 0 : index
    %c0_10 = arith.constant 0 : index
    %13 = vector.load %arg2[%c1, %c0_9, %c0_10] : memref<9x8x4xf32, #tpu.memory_space<vmem>>, vector<1x8x4xf32>
    %14 = vector.shape_cast %13 : vector<1x8x4xf32> to vector<8x4xf32>
    %cst_11 = arith.constant dense<0.000000e+00> : vector<8x288xf32>
    %15 = tpu.matmul %14, %12, %cst_11 {dimension_numbers = #tpu.dot_dimension_numbers<[1], [0], [0], [1], [0, 0, 1, 1], [], []>} : vector<8x4xf32>, vector<4x288xf32>, vector<8x288xf32> -> vector<8x288xf32>
    %16 = arith.addf %11, %15 : vector<8x288xf32>
    %17 = vector.extract_strided_slice %5 {offsets = [0, 2], sizes = [4, 288], strides = [1, 1]} : vector<4x326xf32> to vector<4x288xf32>
    %c2 = arith.constant 2 : index
    %c0_12 = arith.constant 0 : index
    %c0_13 = arith.constant 0 : index
    %18 = vector.load %arg2[%c2, %c0_12, %c0_13] : memref<9x8x4xf32, #tpu.memory_space<vmem>>, vector<1x8x4xf32>
    %19 = vector.shape_cast %18 : vector<1x8x4xf32> to vector<8x4xf32>
    %cst_14 = arith.constant dense<0.000000e+00> : vector<8x288xf32>
    %20 = tpu.matmul %19, %17, %cst_14 {dimension_numbers = #tpu.dot_dimension_numbers<[1], [0], [0], [1], [0, 0, 1, 1], [], []>} : vector<8x4xf32>, vector<4x288xf32>, vector<8x288xf32> -> vector<8x288xf32>
    %21 = arith.addf %16, %20 : vector<8x288xf32>
    %22 = vector.extract_strided_slice %5 {offsets = [0, 18], sizes = [4, 288], strides = [1, 1]} : vector<4x326xf32> to vector<4x288xf32>
    %c3 = arith.constant 3 : index
    %c0_15 = arith.constant 0 : index
    %c0_16 = arith.constant 0 : index
    %23 = vector.load %arg2[%c3, %c0_15, %c0_16] : memref<9x8x4xf32, #tpu.memory_space<vmem>>, vector<1x8x4xf32>
    %24 = vector.shape_cast %23 : vector<1x8x4xf32> to vector<8x4xf32>
    %cst_17 = arith.constant dense<0.000000e+00> : vector<8x288xf32>
    %25 = tpu.matmul %24, %22, %cst_17 {dimension_numbers = #tpu.dot_dimension_numbers<[1], [0], [0], [1], [0, 0, 1, 1], [], []>} : vector<8x4xf32>, vector<4x288xf32>, vector<8x288xf32> -> vector<8x288xf32>
    %26 = arith.addf %21, %25 : vector<8x288xf32>
    %27 = vector.extract_strided_slice %5 {offsets = [0, 19], sizes = [4, 288], strides = [1, 1]} : vector<4x326xf32> to vector<4x288xf32>
    %c4 = arith.constant 4 : index
    %c0_18 = arith.constant 0 : index
    %c0_19 = arith.constant 0 : index
    %28 = vector.load %arg2[%c4, %c0_18, %c0_19] : memref<9x8x4xf32, #tpu.memory_space<vmem>>, vector<1x8x4xf32>
    %29 = vector.shape_cast %28 : vector<1x8x4xf32> to vector<8x4xf32>
    %cst_20 = arith.constant dense<0.000000e+00> : vector<8x288xf32>
    %30 = tpu.matmul %29, %27, %cst_20 {dimension_numbers = #tpu.dot_dimension_numbers<[1], [0], [0], [1], [0, 0, 1, 1], [], []>} : vector<8x4xf32>, vector<4x288xf32>, vector<8x288xf32> -> vector<8x288xf32>
    %31 = arith.addf %26, %30 : vector<8x288xf32>
    %32 = vector.extract_strided_slice %5 {offsets = [0, 20], sizes = [4, 288], strides = [1, 1]} : vector<4x326xf32> to vector<4x288xf32>
    %c5 = arith.constant 5 : index
    %c0_21 = arith.constant 0 : index
    %c0_22 = arith.constant 0 : index
    %33 = vector.load %arg2[%c5, %c0_21, %c0_22] : memref<9x8x4xf32, #tpu.memory_space<vmem>>, vector<1x8x4xf32>
    %34 = vector.shape_cast %33 : vector<1x8x4xf32> to vector<8x4xf32>
    %cst_23 = arith.constant dense<0.000000e+00> : vector<8x288xf32>
    %35 = tpu.matmul %34, %32, %cst_23 {dimension_numbers = #tpu.dot_dimension_numbers<[1], [0], [0], [1], [0, 0, 1, 1], [], []>} : vector<8x4xf32>, vector<4x288xf32>, vector<8x288xf32> -> vector<8x288xf32>
    %36 = arith.addf %31, %35 : vector<8x288xf32>
    %37 = vector.extract_strided_slice %5 {offsets = [0, 36], sizes = [4, 288], strides = [1, 1]} : vector<4x326xf32> to vector<4x288xf32>
    %c6 = arith.constant 6 : index
    %c0_24 = arith.constant 0 : index
    %c0_25 = arith.constant 0 : index
    %38 = vector.load %arg2[%c6, %c0_24, %c0_25] : memref<9x8x4xf32, #tpu.memory_space<vmem>>, vector<1x8x4xf32>
    %39 = vector.shape_cast %38 : vector<1x8x4xf32> to vector<8x4xf32>
    %cst_26 = arith.constant dense<0.000000e+00> : vector<8x288xf32>
    %40 = tpu.matmul %39, %37, %cst_26 {dimension_numbers = #tpu.dot_dimension_numbers<[1], [0], [0], [1], [0, 0, 1, 1], [], []>} : vector<8x4xf32>, vector<4x288xf32>, vector<8x288xf32> -> vector<8x288xf32>
    %41 = arith.addf %36, %40 : vector<8x288xf32>
    %42 = vector.extract_strided_slice %5 {offsets = [0, 37], sizes = [4, 288], strides = [1, 1]} : vector<4x326xf32> to vector<4x288xf32>
    %c7 = arith.constant 7 : index
    %c0_27 = arith.constant 0 : index
    %c0_28 = arith.constant 0 : index
    %43 = vector.load %arg2[%c7, %c0_27, %c0_28] : memref<9x8x4xf32, #tpu.memory_space<vmem>>, vector<1x8x4xf32>
    %44 = vector.shape_cast %43 : vector<1x8x4xf32> to vector<8x4xf32>
    %cst_29 = arith.constant dense<0.000000e+00> : vector<8x288xf32>
    %45 = tpu.matmul %44, %42, %cst_29 {dimension_numbers = #tpu.dot_dimension_numbers<[1], [0], [0], [1], [0, 0, 1, 1], [], []>} : vector<8x4xf32>, vector<4x288xf32>, vector<8x288xf32> -> vector<8x288xf32>
    %46 = arith.addf %41, %45 : vector<8x288xf32>
    %47 = vector.extract_strided_slice %5 {offsets = [0, 38], sizes = [4, 288], strides = [1, 1]} : vector<4x326xf32> to vector<4x288xf32>
    %c8 = arith.constant 8 : index
    %c0_30 = arith.constant 0 : index
    %c0_31 = arith.constant 0 : index
    %48 = vector.load %arg2[%c8, %c0_30, %c0_31] : memref<9x8x4xf32, #tpu.memory_space<vmem>>, vector<1x8x4xf32>
    %49 = vector.shape_cast %48 : vector<1x8x4xf32> to vector<8x4xf32>
    %cst_32 = arith.constant dense<0.000000e+00> : vector<8x288xf32>
    %50 = tpu.matmul %49, %47, %cst_32 {dimension_numbers = #tpu.dot_dimension_numbers<[1], [0], [0], [1], [0, 0, 1, 1], [], []>} : vector<8x4xf32>, vector<4x288xf32>, vector<8x288xf32> -> vector<8x288xf32>
    %51 = arith.addf %46, %50 : vector<8x288xf32>
    %c0_33 = arith.constant 0 : index
    %c0_34 = arith.constant 0 : index
    %c0_35 = arith.constant 0 : index
    %52 = vector.load %arg4[%c0_33, %c0_34, %c0_35] : memref<1x8x1xf32, #tpu.memory_space<vmem>>, vector<1x8x1xf32>
    %53 = vector.shape_cast %52 : vector<1x8x1xf32> to vector<8x1xf32>
    %54 = vector.broadcast %53 : vector<8x1xf32> to vector<8x288xf32>
    %55 = arith.mulf %51, %54 : vector<8x288xf32>
    %c0_36 = arith.constant 0 : index
    %c0_37 = arith.constant 0 : index
    %c0_38 = arith.constant 0 : index
    %56 = vector.load %arg5[%c0_36, %c0_37, %c0_38] : memref<1x8x288xf32, #tpu.memory_space<vmem>>, vector<1x8x288xf32>
    %57 = vector.shape_cast %56 : vector<1x8x288xf32> to vector<8x288xf32>
    %58 = vector.shape_cast %55 : vector<8x288xf32> to vector<1x8x288xf32>
    tpu.vector_store %arg5[%c0_36, %c0_37, %c0_38], %58 {strides = array<i32>} : memref<1x8x288xf32, #tpu.memory_space<vmem>>, vector<1x8x288xf32>,
    return
  }
  func.func @transform_0(%arg0: i32) -> (i32, i32, i32) {
    %c0_i32 = arith.constant 0 : i32
    %c0_i32_0 = arith.constant 0 : i32
    %c0_i32_1 = arith.constant 0 : i32
    return %arg0, %c0_i32, %c0_i32_0 : i32, i32, i32
  }
  func.func @transform_1(%arg0: i32) -> (i32, i32, i32) {
    %c0_i32 = arith.constant 0 : i32
    %c0_i32_0 = arith.constant 0 : i32
    %c0_i32_1 = arith.constant 0 : i32
    %c0_i32_2 = arith.constant 0 : i32
    return %c0_i32, %c0_i32_0, %c0_i32_1 : i32, i32, i32
  }
  func.func @transform_2(%arg0: i32) -> (i32, i32, i32) {
    %c0_i32 = arith.constant 0 : i32
    %c0_i32_0 = arith.constant 0 : i32
    %c0_i32_1 = arith.constant 0 : i32
    return %arg0, %c0_i32, %c0_i32_0 : i32, i32, i32
  }
  func.func @transform_3(%arg0: i32) -> (i32, i32, i32) {
    %c0_i32 = arith.constant 0 : i32
    %c0_i32_0 = arith.constant 0 : i32
    %c0_i32_1 = arith.constant 0 : i32
    return %arg0, %c0_i32, %c0_i32_0 : i32, i32, i32
  }
  func.func @transform_4(%arg0: i32) -> (i32, i32, i32) {
    %c0_i32 = arith.constant 0 : i32
    %c0_i32_0 = arith.constant 0 : i32
    %c0_i32_1 = arith.constant 0 : i32
    return %arg0, %c0_i32, %c0_i32_0 : i32, i32, i32
  }
}

</mosaic_0001>

<bundles_post_ra>
// kernel: tpu_custom_call.1
= control target key start
LH: loop header
LB: loop body
LE: loop exit
PB: predicated region body
PF: predicated region fallthrough
CT: control target
= control target key end

     0   :  { %9 = vsyncpa [#allocation3], 0  ;;  %s1586_s0 = inlined_call_operand.vmem [shape: f32[2,4,326], index: 0, kind: input, shape index: {}]   ;;  %s1587_s1 = inlined_call_operand.vmem [shape: f32[9,8,4], index: 1, kind: input, shape index: {}]   ;;  %s1588_s2 = inlined_call_operand.vmem [shape: f32[2,4,1], index: 2, kind: input, shape index: {}]   ;;  %s1589_s3 = inlined_call_operand.vmem [shape: f32[2,8,1], index: 3, kind: input, shape index: {}]   ;;  %s1590_s4 = inlined_call_operand.hbm [shape: f32[2,8,288], index: 4, kind: output, shape index: {}]  }
   0x1   :  { %11 = vsyncpa [#allocation3 + $0x1], 0  ;;  %s1371_s15 = smov 0   ;;  %s1373_s16 = smov 0  }
   0x2   :  { %s1375_s17 = smov 0   ;;  %s1377_s18 = smov 0  }
   0x3 LB: > { %s1392_s19 = sadd.s32 4294967295, %s1334_s18   ;;  %s1146_s20 = sadd.s32 4294967294, %s1334_s18   ;;  %s1334_s18 = sphi %s1377_s18, %s1596_s18   ;;  %s1330_s17 = sphi %s1375_s17, %s1595_s17   ;;  %s1326_s16 = sphi %s1373_s16, %s1594_s16   ;;  %s1322_s15 = sphi %s1371_s15, %s1593_s15  }
   0x4   : > { %s1396_s21 = sadd.s32 1, %s1334_s18   ;;  %s123_s22 = sadd.s32 1, %s1330_s17 }
   0x5   : > { %s120_s23 = ssub.s32 %s1334_s18, %s1396_s21  ;;  %p133_p0 = scmp.ne.s32.totalorder %s1330_s17, %s1326_s16 }
   0x6   : > { %p121_p1 = scmp.eq.s32.totalorder %s120_s23, 0  ;;  %p134_p2 = scmp.eq.s32.totalorder %s1392_s19, 1 }
   0x7   : > { %p139_p3 = scmp.ne.s32.totalorder %s1326_s16, %s1322_s15  ;;  %p140_p4 = scmp.eq.s32.totalorder %s1146_s20, 1 }
   0x8   : > { %s1407_s24 = scalar_select %p121_p1, %s1330_s17, %s123_s22  }
   0x9   : > { %p1409_p5 = por %p134_p2, %p133_p0  ;;  %p1413_p6 = por %p140_p4, %p139_p3 }
   0xa   : > { %p1149_p7 = scmp.ge.s32.totalorder %s1334_s18, 1  ;;  %p183_p8 = scmp.lt.s32.totalorder %s1334_s18, 3 }
   0xc   : > { %p184_p9 = pnand %p1149_p7, %p183_p8 }
   0xd   : > { %p217_p10 = scmp.lt.s32.totalorder (!%p184_p9), %s1392_s19, 1  ;;  %s1338_s10 = smov (!%p184_p9), 127  }
   0xe   : > { %187 = sbr.rel (%p184_p9) target bundleno = 475 (0x1db), region = 36  ;;  %s1339_s11 = smov (!%p184_p9), 126  }
   0xf   : > { %s1340_s12 = smov (!%p184_p9), 110   ;;  %s1341_s13 = smov (!%p184_p9), 109  }
  0x10   : > { %s1342_s14 = smov (!%p184_p9), 108   ;;  %s1343_s20 = smov (!%p184_p9), 92  }
  0x11   : > { %s1344_s22 = smov (!%p184_p9), 91   ;;  %s1345_s23 = smov (!%p184_p9), 90  }
  0x12   : > { %s214_s7 = sand.u32 (!%p184_p9), 1, %s1326_s16   ;;  %s1292_s29 = scalar_lea.hbm (!%p184_p9), %s1590_s4, 48 }
  0x13   : > { %v1336_v0 = vmov 0   ;;  %s1421_s27 = scalar_select %p217_p10, %s1392_s19, 1  ;;  %v1337_v2 = vmov 839922192   ;;  %vm268_vm0 = vcmask 1043456   ;;  %vm264_vm1 = vcmask 31744  }
  0x14   : > { %1270 = vset.pattern.permute.xlu0 %v1336_v0  ;;  %1271 = vset.pattern.permute.xlu1 %v1336_v0  ;;  %v238_v3 = vunpack.c.l.s4 %v1337_v2  ;;  %v244_v38 = vld [vmem:[%s1587_s1] sm:$0xff]  ;;  %vm424_vm2 = vcmask 1031168   ;;  %v1153_v44 = vld [vmem:[%s1587_s1 + $0x8] sm:$0xff]  ;;  %vm261_vm3 = vcmask 1039360   ;;  %v1166_v49 = vld [vmem:[%s1587_s1 + $0x10] sm:$0xff]  ;;  %vm513_vm4 = vcmask 900096  }
  0x15   : > { %s1151_s28 = sshll.u32 %s1421_s27, 2  ;;  %s1219_s6 = smul.u32 12, %s1421_s27  ;;  %v1173_v57 = vld [vmem:[%s1587_s1 + $0x18] sm:$0xff]  ;;  %vm602_vm5 = vcmask 891904   ;;  %vm691_vm6 = vcmask 883712   ;;  %v1180_v62 = vld [vmem:[%s1587_s1 + $0x20] sm:$0xff] }
  0x16   : > { %s225_s5 = scalar_lea.vmem %s1588_s2, %s1151_s28  ;;  %v239_v4 = vunpack.c.0.s8 %v238_v3  ;;  %v1187_v3 = vld [vmem:[%s1587_s1 + $0x28] sm:$0xff]  ;;  %vm780_vm7 = vcmask 752640   ;;  %vm869_vm8 = vcmask 744448   ;;  %vm958_vm9 = vcmask 736256   ;;  %s1218_s8 = smul.u32 24, %s214_s7 }
  0x17   : > { %v232_v1 = vld [vmem:[%s225_s5] sm:$0xf]  ;;  %s221_s9 = scalar_lea.vmem %s1586_s0, %s1219_s6  ;;  %vm1044_vm10 = vcmask 261120  }
  0x18   : > { %235 = vperm.xlu0 %1270, %v232_v1   ;;  %v230_v6 = vld [vmem:[%s221_s9] sm:$0xff]  ;;  %v231_v7 = vld [vmem:[%s221_s9 + $0x8] sm:$0xf]  ;;  %s1220_s9 = smul.u32 24, %s1392_s19 }
  0x8a   : > { %v236_v5 = vpop.permute.xlu0 %235 }
  0x8b   : > { %v240_v8 = vperm.slane %v236_v5, %v239_v4 }
  0x8d   : > { %v1431_v9 = vmul.f32 %v240_v8, %v230_v6  ;;  %v1433_v10 = vmul.f32 %v240_v8, %v231_v7  ;;  %v1194_v8 = vld [vmem:[%s1587_s1 + $0x30] sm:$0xff] }
  0x8f   : > { %249 = vst [vmem:[#allocation1] ss:$2 sm:$0xff] %v1431_v9 }
  0x90   : > { %251 = vst [vmem:[#allocation1 + $0x10] ss:$2 sm:$0xff] %v1433_v10 }
  0x96   : > { %v252_v11 = vld.sshfl [vmem:[#allocation1] sm:$0xff pattern:$0x75316420]  ;;  %v253_v12 = vld.sshfl [vmem:[#allocation1 + $0x8] sm:$0xff pattern:$0x75316420] }
  0x97   : > { %v254_v13 = vld.sshfl [vmem:[#allocation1 + $0x10] sm:$0xff pattern:$0x75316420]  ;;  %255 = vrot.lane.b32.xlu1 %v252_v11, %s1338_s10  ;;  %335 = vst [vmem:[#allocation1] ss:$2 sm:$0xff] %v1431_v9 }
  0x98   : > { %259 = vrot.lane.b32.xlu0 %v254_v13, %s1338_s10  ;;  %337 = vst [vmem:[#allocation1 + $0x10] ss:$2 sm:$0xff] %v1433_v10 }
  0x9e   : > { %v338_v14 = vld.sshfl [vmem:[#allocation1] sm:$0xff pattern:$0x75316420]  ;;  %v1439_v15 = vld.sshfl [vmem:[#allocation1 + $0x8] sm:$0xff pattern:$0x75316420] }
  0x9f   : > { %257 = vrot.lane.b32.xlu1 %v253_v12, %s1338_s10  ;;  %1160 = vmatpush.msk.msra.mxu3 %vm268_vm0, %v338_v14  ;;  %412 = vst [vmem:[#allocation1] ss:$2 sm:$0xff] %v1431_v9  ;;  %v1443_v16 = vld.sshfl [vmem:[#allocation1 + $0x10] sm:$0xff pattern:$0x75316420]  ;;  %v1201_v14 = vld [vmem:[%s1587_s1 + $0x38] sm:$0xff] }
  0xa0   : > { %414 = vst [vmem:[#allocation1 + $0x10] ss:$2 sm:$0xff] %v1433_v10  ;;  %1161 = vmatmul.msk.f32.vlgmr.msra.gmra.mxu3 %vm264_vm1, %v244_v38 }
  0xa6   : > { %v415_v17 = vld.sshfl [vmem:[#allocation1] sm:$0xff pattern:$0x75316420]  ;;  %v416_v18 = vld.sshfl [vmem:[#allocation1 + $0x8] sm:$0xff pattern:$0x75316420] }
  0xa7   : > { %v417_v19 = vld.sshfl [vmem:[#allocation1 + $0x10] sm:$0xff pattern:$0x75316420]  ;;  %418 = vrot.lane.b32.xlu2 %v415_v17, %s1339_s11  ;;  %501 = vst [vmem:[#allocation1] ss:$2 sm:$0xff] %v1431_v9 }
  0xa8   : > { %422 = vrot.lane.b32.xlu0 %v417_v19, %s1339_s11  ;;  %503 = vst [vmem:[#allocation1 + $0x10] ss:$2 sm:$0xff] %v1433_v10  ;;  %v1208_v19 = vld [vmem:[%s1587_s1 + $0x40] sm:$0xff] }
  0xae   : > { %v505_v20 = vld.sshfl [vmem:[#allocation1 + $0x8] sm:$0xff pattern:$0x75316420]  ;;  %v504_v21 = vld.sshfl [vmem:[#allocation1] sm:$0xff pattern:$0x75316420] }
  0xaf   : > { %420 = vrot.lane.b32.xlu2 %v416_v18, %s1339_s11  ;;  %509 = vrot.lane.b32.xlu1 %v505_v20, %s1340_s12  ;;  %590 = vst [vmem:[#allocation1] ss:$2 sm:$0xff] %v1431_v9  ;;  %v506_v22 = vld.sshfl [vmem:[#allocation1 + $0x10] sm:$0xff pattern:$0x75316420] }
  0xb0   : > { %507 = vrot.lane.b32.xlu0 %v504_v21, %s1340_s12  ;;  %592 = vst [vmem:[#allocation1 + $0x10] ss:$2 sm:$0xff] %v1433_v10 }
  0xb6   : > { %v594_v23 = vld.sshfl [vmem:[#allocation1 + $0x8] sm:$0xff pattern:$0x75316420]  ;;  %v593_v24 = vld.sshfl [vmem:[#allocation1] sm:$0xff pattern:$0x75316420] }
  0xb7   : > { %511 = vrot.lane.b32.xlu2 %v506_v22, %s1340_s12  ;;  %v595_v25 = vld.sshfl [vmem:[#allocation1 + $0x10] sm:$0xff pattern:$0x75316420]  ;;  %679 = vst [vmem:[#allocation1] ss:$2 sm:$0xff] %v1431_v9  ;;  %s1152_s12 = sshll.u32 %s1421_s27, 3 }
  0xb8   : > { %681 = vst [vmem:[#allocation1 + $0x10] ss:$2 sm:$0xff] %v1433_v10  ;;  %600 = vrot.lane.b32.xlu1 %v595_v25, %s1341_s13  ;;  %598 = vrot.lane.b32.xlu0 %v594_v23, %s1341_s13 }
  0xbe   : > { %v682_v26 = vld.sshfl [vmem:[#allocation1] sm:$0xff pattern:$0x75316420]  ;;  %v683_v27 = vld.sshfl [vmem:[#allocation1 + $0x8] sm:$0xff pattern:$0x75316420] }
  0xbf   : > { %596 = vrot.lane.b32.xlu2 %v593_v24, %s1341_s13  ;;  %768 = vst [vmem:[#allocation1] ss:$2 sm:$0xff] %v1431_v9  ;;  %v684_v28 = vld.sshfl [vmem:[#allocation1 + $0x10] sm:$0xff pattern:$0x75316420]  ;;  %s216_s13 = scalar_lea.vmem [#allocation2], %s1218_s8 }
  0xc0   : > { %685 = vrot.lane.b32.xlu1 %v682_v26, %s1342_s14  ;;  %770 = vst [vmem:[#allocation1 + $0x10] ss:$2 sm:$0xff] %v1433_v10  ;;  %s1060_s19 = sshll.u32 %s216_s13, 4  ;;  %s1061_s19 = int_to_ptr.vmem [resolvable:$true] %s1060_s19 }
  0xc6   : > { %v772_v29 = vld.sshfl [vmem:[#allocation1 + $0x8] sm:$0xff pattern:$0x75316420]  ;;  %v771_v30 = vld.sshfl [vmem:[#allocation1] sm:$0xff pattern:$0x75316420] }
  0xc7   : > { %687 = vrot.lane.b32.xlu2 %v683_v27, %s1342_s14  ;;  %774 = vrot.lane.b32.xlu0 %v771_v30, %s1343_s20  ;;  %857 = vst [vmem:[#allocation1] ss:$2 sm:$0xff] %v1431_v9  ;;  %v773_v31 = vld.sshfl [vmem:[#allocation1 + $0x10] sm:$0xff pattern:$0x75316420] }
  0xc8   : > { %776 = vrot.lane.b32.xlu1 %v772_v29, %s1343_s20  ;;  %859 = vst [vmem:[#allocation1 + $0x10] ss:$2 sm:$0xff] %v1433_v10 }
  0xce   : > { %v861_v32 = vld.sshfl [vmem:[#allocation1 + $0x8] sm:$0xff pattern:$0x75316420]  ;;  %v860_v33 = vld.sshfl [vmem:[#allocation1] sm:$0xff pattern:$0x75316420] }
  0xcf   : > { %689 = vrot.lane.b32.xlu2 %v684_v28, %s1342_s14  ;;  %778 = vrot.lane.b32.xlu0 %v773_v31, %s1343_s20  ;;  %v862_v34 = vld.sshfl [vmem:[#allocation1 + $0x10] sm:$0xff pattern:$0x75316420]  ;;  %946 = vst [vmem:[#allocation1] ss:$2 sm:$0xff] %v1431_v9  ;;  %s229_s20 = scalar_lea.vmem %s1589_s3, %s1152_s12  ;;  %s1058_s12 = scalar_lea.hbm %s1590_s4, %s1220_s9 }
  0xd0   : > { %865 = vrot.lane.b32.xlu1 %v861_v32, %s1344_s22  ;;  %948 = vst [vmem:[#allocation1 + $0x10] ss:$2 sm:$0xff] %v1433_v10  ;;  %v1033_v5 = vld [vmem:[%s229_s20] sm:$0xff]  ;;  %s1062_s14 = sshll.u32 %s1058_s12, 4  ;;  %s1047_s20 = scalar_lea.sflag [#allocation3], %s214_s7  ;;  %s1063_s14 = int_to_ptr.hbm [resolvable:$true] %s1062_s14 }
  0xd6   : > { %v950_v36 = vld.sshfl [vmem:[#allocation1 + $0x8] sm:$0xff pattern:$0x75316420]  ;;  %v949_v37 = vld.sshfl [vmem:[#allocation1] sm:$0xff pattern:$0x75316420] }
  0xd7   : > { %867 = vrot.lane.b32.xlu2 %v862_v34, %s1344_s22  ;;  %v951_v35 = vld.sshfl [vmem:[#allocation1 + $0x10] sm:$0xff pattern:$0x75316420]  ;;  %863 = vrot.lane.b32.xlu0 %v860_v33, %s1344_s22  ;;  %s1286_s22 = sshra.s32 %s1063_s14, 4  ;;  %s1287_s22 = int_to_ptr.hbm [resolvable:$true] %s1286_s22 }
  0xd8   : > { %956 = vrot.lane.b32.xlu1 %v951_v35, %s1345_s23  ;;  %p1293_p0 = scmp.lt.s32.totalorder %s1287_s22, %s1590_s4 }
  0xdf   : > { %954 = vrot.lane.b32.xlu0 %v950_v36, %s1345_s23  ;;  %952 = vrot.lane.b32.xlu2 %v949_v37, %s1345_s23  ;;  %s1288_s23 = scalar_lea.hbm %s1287_s22, 24 }
  0xe0   : > { %1036 = vperm.xlu1 %1271, %v1033_v5   ;;  %p1289_p11 = scmp.ne.s32.totalorder %s1287_s22, %s1288_s23  ;;  %p1294_p1 = scmp.lt.s32.totalorder %s1292_s29, %s1288_s23 }
  0xe2   : > { %p1290_p12 = pnand %p1289_p11, %p1409_p5  ;;  %p1295_p2 = por %p1294_p1, %p1293_p0 }
  0xe4   : > { %p1291_p13 = pneg %p1290_p12 }
  0xe6   : > { %p1296_p3 = pnand %p1295_p2, %p1291_p13 }
 0x101   : > { %v419_v39 = vpop.permute.xlu2 %418 }
 0x109   : > { %v256_v40 = vpop.permute.xlu1 %255  ;;  %v421_v41 = vpop.permute.xlu2 %420 }
 0x10a   : > { %v260_v42 = vpop.permute.xlu0 %259  ;;  %v425_v43 = vsel %vm424_vm2, %v419_v39, %v421_v41 }
 0x10b   : > { %1158 = vmatpush.msk.msra.mxu2 %vm268_vm0, %v260_v42 }
 0x10c   : > { %1159 = vmatmul.msk.f32.vlgmr.msra.gmra.mxu2 %vm264_vm1, %v1153_v44 }
 0x10d   : > { %1167 = vmatpush.msk.msrb.mxu2 %vm268_vm0, %v425_v43 }
 0x111   : > { %v258_v45 = vpop.permute.xlu1 %257  ;;  %v512_v46 = vpop.permute.xlu2 %511 }
 0x112   : > { %v262_v47 = vsel %vm261_vm3, %v256_v40, %v258_v45  ;;  %v263_v48 = vsel %vm261_vm3, %v258_v45, %v260_v42 }
 0x113   : > { %1154 = vmatpush.msk.msra.mxu0 %vm268_vm0, %v262_v47  ;;  %1156 = vmatpush.msk.msra.mxu1 %vm268_vm0, %v263_v48 }
 0x114   : > { %1155 = vmatmul.msk.f32.vlgmr.msra.gmra.mxu0 %vm264_vm1, %v1153_v44  ;;  %1157 = vmatmul.msk.f32.vlgmr.msra.gmra.mxu1 %vm264_vm1, %v1153_v44 }
 0x115   : > { %1162 = vmatpush.msk.msrb.mxu0 %vm268_vm0, %v1439_v15  ;;  %1164 = vmatpush.msk.msrb.mxu1 %vm268_vm0, %v1443_v16 }
 0x116   : > { %1168 = vmatmul.msk.f32.vlgmr.msrb.gmra.mxu2 %vm264_vm1, %v1166_v49 }
 0x119   : > { %v597_v50 = vpop.permute.xlu2 %596 }
 0x11a   : > { %v423_v51 = vpop.permute.xlu0 %422 }
 0x11b   : > { %1171 = vmatpush.msk.msra.mxu0 %vm268_vm0, %v423_v51  ;;  %v426_v52 = vsel %vm424_vm2, %v421_v41, %v423_v51 }
 0x11c   : > { %1169 = vmatpush.msk.msrb.mxu3 %vm268_vm0, %v426_v52  ;;  %1163 = vmatmul.msk.f32.vlgmr.msrb.gmra.mxu0 %vm264_vm1, %v244_v38 }
 0x11d   : > { %1165 = vmatmul.msk.f32.vlgmr.msrb.gmra.mxu1 %vm264_vm1, %v244_v38  ;;  %1170 = vmatmul.msk.f32.vlgmr.msrb.gmra.mxu3 %vm264_vm1, %v1166_v49 }
 0x11e   : > { %1178 = vmatpush.msk.msra.mxu3 %vm268_vm0, %v512_v46 }
 0x121   : > { %v510_v53 = vpop.permute.xlu1 %509  ;;  %v688_v54 = vpop.permute.xlu2 %687 }
 0x122   : > { %v515_v55 = vsel %vm513_vm4, %v510_v53, %v512_v46  ;;  %v508_v56 = vpop.permute.xlu0 %507 }
 0x123   : > { %v514_v58 = vsel %vm513_vm4, %v508_v56, %v510_v53  ;;  %1176 = vmatpush.msk.msra.mxu2 %vm268_vm0, %v515_v55  ;;  %v367_v27 = vpop.f32.mrf.mxu3 }
 0x124   : > { %1174 = vmatpush.msk.msra.mxu1 %vm268_vm0, %v514_v58  ;;  %1172 = vmatmul.msk.f32.vlgmr.msra.gmra.mxu0 %vm264_vm1, %v1166_v49 }
 0x125   : > { %1175 = vmatmul.msk.f32.vlgmr.msra.gmra.mxu1 %vm264_vm1, %v1173_v57  ;;  %1177 = vmatmul.msk.f32.vlgmr.msra.gmra.mxu2 %vm264_vm1, %v1173_v57 }
 0x126   : > { %1179 = vmatmul.msk.f32.vlgmr.msra.gmra.mxu3 %vm264_vm1, %v1173_v57 }
 0x129   : > { %v690_v59 = vpop.permute.xlu2 %689 }
 0x12a   : > { %v601_v60 = vpop.permute.xlu1 %600  ;;  %v599_v61 = vpop.permute.xlu0 %598  ;;  %v693_v1 = vsel %vm691_vm6, %v688_v54, %v690_v59 }
 0x12b   : > { %v603_v63 = vsel %vm602_vm5, %v597_v50, %v599_v61  ;;  %v604_v0 = vsel %vm602_vm5, %v599_v61, %v601_v60  ;;  %1185 = vmatpush.msk.msrb.mxu2 %vm268_vm0, %v601_v60 }
 0x12c   : > { %1181 = vmatpush.msk.msrb.mxu0 %vm268_vm0, %v603_v63  ;;  %1183 = vmatpush.msk.msrb.mxu1 %vm268_vm0, %v604_v0 }
 0x12d   : > { %1182 = vmatmul.msk.f32.vlgmr.msrb.gmra.mxu0 %vm264_vm1, %v1180_v62  ;;  %1184 = vmatmul.msk.f32.vlgmr.msrb.gmra.mxu1 %vm264_vm1, %v1180_v62 }
 0x12e   : > { %1186 = vmatmul.msk.f32.vlgmr.msrb.gmra.mxu2 %vm264_vm1, %v1180_v62  ;;  %1190 = vmatpush.msk.msra.mxu0 %vm268_vm0, %v693_v1 }
 0x12f   : > { %1192 = vmatpush.msk.msra.mxu1 %vm268_vm0, %v690_v59 }
 0x131   : > { %v868_v11 = vpop.permute.xlu2 %867 }
 0x132   : > { %v686_v2 = vpop.permute.xlu1 %685 }
 0x133   : > { %v692_v4 = vsel %vm691_vm6, %v686_v2, %v688_v54 }
 0x134   : > { %1188 = vmatpush.msk.msrb.mxu3 %vm268_vm0, %v692_v4 }
 0x135   : > { %1189 = vmatmul.msk.f32.vlgmr.msrb.gmra.mxu3 %vm264_vm1, %v1187_v3  ;;  %1191 = vmatmul.msk.f32.vlgmr.msra.gmra.mxu0 %vm264_vm1, %v1187_v3 }
 0x136   : > { %1193 = vmatmul.msk.f32.vlgmr.msra.gmra.mxu1 %vm264_vm1, %v1187_v3 }
 0x139   : > { %v775_v6 = vpop.permute.xlu0 %774  ;;  %v953_v20 = vpop.permute.xlu2 %952 }
 0x13a   : > { %v777_v7 = vpop.permute.xlu1 %776 }
 0x13b   : > { %v781_v9 = vsel %vm780_vm7, %v775_v6, %v777_v7 }
 0x13c   : > { %1195 = vmatpush.msk.msra.mxu2 %vm268_vm0, %v781_v9 }
 0x13d   : > { %1196 = vmatmul.msk.f32.vlgmr.msra.gmra.mxu2 %vm264_vm1, %v1194_v8 }
 0x141   : > { %v779_v10 = vpop.permute.xlu0 %778 }
 0x142   : > { %v782_v12 = vsel %vm780_vm7, %v777_v7, %v779_v10  ;;  %v866_v13 = vpop.permute.xlu1 %865  ;;  %1199 = vmatpush.msk.msrb.mxu0 %vm268_vm0, %v779_v10 }
 0x143   : > { %v871_v15 = vsel %vm869_vm8, %v866_v13, %v868_v11  ;;  %1197 = vmatpush.msk.msra.mxu3 %vm268_vm0, %v782_v12  ;;  %1200 = vmatmul.msk.f32.vlgmr.msrb.gmra.mxu0 %vm264_vm1, %v1194_v8 }
 0x144   : > { %1204 = vmatpush.msk.msrb.mxu2 %vm268_vm0, %v871_v15  ;;  %1198 = vmatmul.msk.f32.vlgmr.msra.gmra.mxu3 %vm264_vm1, %v1194_v8 }
 0x145   : > { %1206 = vmatpush.msk.msrb.mxu3 %vm268_vm0, %v868_v11  ;;  %1205 = vmatmul.msk.f32.vlgmr.msrb.gmra.mxu2 %vm264_vm1, %v1201_v14 }
 0x149   : > { %v864_v16 = vpop.permute.xlu0 %863 }
 0x14a   : > { %v957_v17 = vpop.permute.xlu1 %956  ;;  %v870_v18 = vsel %vm869_vm8, %v864_v16, %v866_v13 }
 0x14b   : > { %1213 = vmatpush.msk.msra.mxu2 %vm268_vm0, %v957_v17  ;;  %1202 = vmatpush.msk.msrb.mxu1 %vm268_vm0, %v870_v18 }
 0x14c   : > { %1203 = vmatmul.msk.f32.vlgmr.msrb.gmra.mxu1 %vm264_vm1, %v1201_v14  ;;  %1207 = vmatmul.msk.f32.vlgmr.msrb.gmra.mxu3 %vm264_vm1, %v1201_v14 }
 0x14d   : > { %1214 = vmatmul.msk.f32.vlgmr.msra.gmra.mxu2 %vm264_vm1, %v1208_v19 }
 0x151   : > { %v955_v21 = vpop.permute.xlu0 %954 }
 0x152   : > { %v959_v22 = vsel %vm958_vm9, %v953_v20, %v955_v21  ;;  %v960_v23 = vsel %vm958_vm9, %v955_v21, %v957_v17  ;;  %v1037_v6 = vpop.permute.xlu1 %1036 }
 0x153   : > { %1209 = vmatpush.msk.msra.mxu0 %vm268_vm0, %v959_v22  ;;  %1211 = vmatpush.msk.msra.mxu1 %vm268_vm0, %v960_v23 }
 0x154   : > { %1210 = vmatmul.msk.f32.vlgmr.msra.gmra.mxu0 %vm264_vm1, %v1208_v19  ;;  %1212 = vmatmul.msk.f32.vlgmr.msra.gmra.mxu1 %vm264_vm1, %v1208_v19 }
 0x18f   : > { %v332_v26 = vpop.f32.mrf.mxu2 }
 0x191   : > { %v292_v24 = vpop.f32.mrf.mxu0  ;;  %v312_v25 = vpop.f32.mrf.mxu1 }
 0x192   : > { %v368_v42 = vadd.f32 %v367_v27, %v292_v24 }
 0x199   : > { %v387_v28 = vpop.f32.mrf.mxu0  ;;  %v453_v30 = vpop.f32.mrf.mxu2 }
 0x19a   : > { %v407_v29 = vpop.f32.mrf.mxu1  ;;  %v388_v39 = vadd.f32 %v387_v28, %v312_v25  ;;  %v496_v47 = vadd.f32 %v453_v30, %v368_v42 }
 0x19b   : > { %v408_v41 = vadd.f32 %v407_v29, %v332_v26 }
 0x1a0   : > { %v473_v31 = vpop.f32.mrf.mxu3 }
 0x1a1   : > { %v493_v32 = vpop.f32.mrf.mxu0  ;;  %v497_v46 = vadd.f32 %v473_v31, %v388_v39 }
 0x1a2   : > { %v542_v33 = vpop.f32.mrf.mxu1  ;;  %v498_v48 = vadd.f32 %v493_v32, %v408_v41 }
 0x1a3   : > { %v585_v52 = vadd.f32 %v542_v33, %v496_v47 }
 0x1a8   : > { %v562_v34 = vpop.f32.mrf.mxu2 }
 0x1a9   : > { %v582_v35 = vpop.f32.mrf.mxu3  ;;  %v586_v49 = vadd.f32 %v562_v34, %v497_v46 }
 0x1aa   : > { %v631_v36 = vpop.f32.mrf.mxu0  ;;  %v651_v37 = vpop.f32.mrf.mxu1  ;;  %v587_v50 = vadd.f32 %v582_v35, %v498_v48 }
 0x1ab   : > { %v675_v53 = vadd.f32 %v651_v37, %v586_v49  ;;  %v674_v58 = vadd.f32 %v631_v36, %v585_v52 }
 0x1b1   : > { %v671_v38 = vpop.f32.mrf.mxu2 }
 0x1b2   : > { %v740_v44 = vpop.f32.mrf.mxu0  ;;  %v676_v54 = vadd.f32 %v671_v38, %v587_v50 }
 0x1b3   : > { %v760_v45 = vpop.f32.mrf.mxu1  ;;  %v764_v59 = vadd.f32 %v740_v44, %v675_v53 }
 0x1b4   : > { %v765_v60 = vadd.f32 %v760_v45, %v676_v54 }
 0x1b8   : > { %v720_v40 = vpop.f32.mrf.mxu3 }
 0x1b9   : > { %v763_v61 = vadd.f32 %v720_v40, %v674_v58 }
 0x1c0   : > { %v809_v43 = vpop.f32.mrf.mxu2  ;;  %v849_v56 = vpop.f32.mrf.mxu0 }
 0x1c1   : > { %v852_v63 = vadd.f32 %v809_v43, %v763_v61  ;;  %v854_v0 = vadd.f32 %v849_v56, %v765_v60 }
 0x1c7   : > { %v829_v51 = vpop.f32.mrf.mxu3 }
 0x1c8   : > { %v918_v55 = vpop.f32.mrf.mxu2  ;;  %v853_v62 = vadd.f32 %v829_v51, %v764_v59 }
 0x1c9   : > { %v898_v57 = vpop.f32.mrf.mxu1 }
 0x1ca   : > { %v941_v2 = vadd.f32 %v898_v57, %v852_v63  ;;  %v942_v3 = vadd.f32 %v918_v55, %v853_v62 }
 0x1cf   : > { %v938_v1 = vpop.f32.mrf.mxu3 }
 0x1d0   : > { %v943_v4 = vadd.f32 %v938_v1, %v854_v0  ;;  %v1027_v5 = vpop.f32.mrf.mxu2 }
 0x1d1   : > { %v987_v7 = vpop.f32.mrf.mxu0  ;;  %v1007_v8 = vpop.f32.mrf.mxu1 }
 0x1d2   : > { %v1030_v9 = vadd.f32 %v987_v7, %v941_v2  ;;  %v1031_v10 = vadd.f32 %v1007_v8, %v942_v3  ;;  %v1032_v11 = vadd.f32 %v1027_v5, %v943_v4 }
 0x1d4   : > { %v1039_v12 = vmul.f32 %v1037_v6, %v1030_v9  ;;  %v1040_v13 = vmul.f32 %v1037_v6, %v1031_v10  ;;  %v1041_v14 = vmul.f32 %v1037_v6, %v1032_v11 }
 0x1d6   : > { %1042 = vst [vmem:[%s216_s13] sm:$0xff] %v1039_v12 }
 0x1d7   : > { %1043 = vst [vmem:[%s216_s13 + $0x8] sm:$0xff] %v1040_v13 }
 0x1d8   : > { %1045 = vst.msk [vmem:[%s216_s13 + $0x10] sm:$0xff] %vm1044_vm10, %v1041_v14 }
 0x1d9   : > { %1299 = shalt.err (!%p1296_p3)
}
 0x1da   : > { %1221 = dma.vmem_to_hbm [thread:$0]  (%p1409_p5), %s1061_s19, 384, %s1063_s14, %s1047_s20  }
 0x1db PF: > { %p1227_p4 = scmp.ge.s32.totalorder %s1334_s18, 2  ;;  %s1074_s6 = sand.u32 1, %s1322_s15  }
 0x1dc   : > { %s1075_s7 = scalar_lea.sflag [#allocation3], %s1074_s6 }
 0x1dd   : > { %p1224_p7 = pnand %p1227_p4, %p1413_p6 }
 0x1df   : > { %p1225_p8 = pneg %p1224_p7 }
 0x1e1   : > { %1317 = dma.done.wait (%p1225_p8), %s1075_s7, 384  }
 0x1e2   : > { %1319 = vsyncadd (%p1225_p8), %s1075_s7, 4294966912  ;;  %p14_p9 = scmp.ge.s32.totalorder %s1396_s21, 4   ;;  %s1593_s15 = smov %s1326_s16 }
 0x1e3   : > { %s1594_s16 = smov %s1330_s17  ;;  %s1595_s17 = smov %s1407_s24 }
 0x1e4   : > { %s1596_s18 = smov %s1396_s21  ;;  %16 = sbr.rel (!%p14_p9) target bundleno = 3 (0x3), region = 94 }
 0x1e9   :  { %1081 = vsyncpa [#allocation3], 1 }
 0x1ea   :  { %1083 = vsyncpa [#allocation3 + $0x1], 1 }

</bundles_post_ra>
